<compile_context>
chip_gen: v5e
topology: v5e:2x2
jax: 0.10.0
libtpu: 0.0.40
codegen_flags: <defaults>
</compile_context>

<pallas_src>
import math
import functools

import jax
import jax.numpy as jnp
from jax import lax
from jax.experimental import pallas as pl
from jax.experimental.pallas import tpu as pltpu


# ----------------------------- config -----------------------------------
class Config:
    hidden_size = 32
    num_attention_heads = 4
    intermediate_size = 64
    num_hidden_layers = 2
    layer_norm_eps = 1e-12
    attention_probs_dropout_prob = 0.0   # eval mode -> identity
    hidden_dropout_prob = 0.0            # eval mode -> identity


# f32 by default (exact parity with torch).  Set to jnp.bfloat16 on v6e/v7x for
# ~2x MXU throughput / half the weight DMA bytes at production sizes.
MATMUL_DTYPE = jnp.float32


# --------------------------- helpers --------------------------------------
def _layernorm(x, gamma, beta, eps):
    mean = jnp.mean(x, axis=-1, keepdims=True)
    var = jnp.mean((x - mean) ** 2, axis=-1, keepdims=True)   # biased, like torch
    inv = lax.rsqrt(var + eps)
    return (x - mean) * inv * gamma + beta


def _gelu_exact(x):
    # HuggingFace gelu: x * 0.5 * (1 + erf(x / sqrt(2)))
    return x * 0.5 * (1.0 + lax.erf(x * (1.0 / math.sqrt(2.0))))


# --------------------------- kernel body -----------------------------------
def _encoder_kernel(*refs, num_heads, head_size, eps, has_mask, matmul_dtype):
    if has_mask:
        (x_ref, mask_ref,
         wqkv_ref, bqkv_ref, wo_ref, bo_ref, ln1g_ref, ln1b_ref,
         wi_ref, bi_ref, wo2_ref, bo2_ref, ln2g_ref, ln2b_ref,
         out_ref, hid_ref) = refs
    else:
        (x_ref,
         wqkv_ref, bqkv_ref, wo_ref, bo_ref, ln1g_ref, ln1b_ref,
         wi_ref, bi_ref, wo2_ref, bo2_ref, ln2g_ref, ln2b_ref,
         out_ref, hid_ref) = refs
        mask_ref = None

    l = pl.program_id(1)                     # layer index ("arbitrary" axis)

    # Layer 0: load this example's hidden state into the resident VMEM carry.
    @pl.when(l == 0)
    def _load_input():
        hid_ref[...] = x_ref[0].astype(jnp.float32)

    h_in = hid_ref[...]                      # (S, H) float32, resident carry
    H = h_in.shape[-1]
    nh, hd = num_heads, head_size

    def _mm(a, b):
        return jnp.dot(a.astype(matmul_dtype), b.astype(matmul_dtype),
                       preferred_element_type=jnp.float32)

    def _bmm(eq, a, b):
        return jnp.einsum(eq, a.astype(matmul_dtype), b.astype(matmul_dtype),
                          preferred_element_type=jnp.float32)

    # --- fused QKV projection: one MXU push instead of three ---
    qkv = _mm(h_in, wqkv_ref[0]) + bqkv_ref[0]           # (S, 3H)

    def _split_heads(base):
        return jnp.stack(
            [qkv[:, base + h * hd: base + (h + 1) * hd] for h in range(nh)],
            axis=0)                                       # (nh, S, hd)

    q = _split_heads(0)
    k = _split_heads(H)
    v = _split_heads(2 * H)

    # --- attention, batched over heads (single leading batch dim) ---
    scale = 1.0 / math.sqrt(hd)
    scores = _bmm("hqd,hkd->hqk", q, k) * scale           # (nh, S, S)
    if has_mask:
        scores = scores + mask_ref[0, 0]                  # (1, S) broadcasts
    scores = scores - jnp.max(scores, axis=-1, keepdims=True)
    e = jnp.exp(scores)
    probs = e * pl.reciprocal(jnp.sum(e, axis=-1, keepdims=True), approx=True)
    ctx_heads = _bmm("hqk,hkd->hqd", probs, v)            # (nh, S, hd)
    ctx = jnp.concatenate([ctx_heads[h] for h in range(nh)], axis=-1)  # (S, H)

    # --- BertSelfOutput: dense + residual + LayerNorm ---
    attn = _mm(ctx, wo_ref[0]) + bo_ref[0]
    h1 = _layernorm(attn + h_in, ln1g_ref[0], ln1b_ref[0], eps)

    # --- BertIntermediate + BertOutput ---
    inter = _gelu_exact(_mm(h1, wi_ref[0]) + bi_ref[0])
    ffn = _mm(inter, wo2_ref[0]) + bo2_ref[0]
    h2 = _layernorm(ffn + h1, ln2g_ref[0], ln2b_ref[0], eps)

    hid_ref[...] = h2                                     # carry to next layer

    @pl.when(l == pl.num_programs(1) - 1)
    def _write_out():
        out_ref[0] = h2.astype(out_ref.dtype)


# ----------------------------- wrapper --------------------------------------
def _stacked_layer_spec(w):
    """BlockSpec for an (L, ...) stacked weight: one layer slice per grid step."""
    tail_zeros = (0,) * (w.ndim - 1)
    return pl.BlockSpec((1,) + tuple(w.shape[1:]),
                        lambda b, l: (l,) + tail_zeros)


def bert_encoder_pallas(x, attention_mask, stacked_params, config,
                        *, matmul_dtype=MATMUL_DTYPE):
    """x: (B, S, H) f32; attention_mask: None or additive mask broadcastable to
    (B, 1, 1, S); stacked_params: dict of (L, ...) arrays."""
    B, S, H = x.shape
    L = config.num_hidden_layers
    nh = config.num_attention_heads
    hd = H // nh
    has_mask = attention_mask is not None

    weight_order = ["wqkv", "bqkv", "wo", "bo", "ln1_g", "ln1_b",
                    "wi", "bi", "wo2", "bo2", "ln2_g", "ln2_b"]
    weights = [stacked_params[k] for k in weight_order]

    in_specs = [pl.BlockSpec((1, S, H), lambda b, l: (b, 0, 0))]   # hidden
    inputs = [x]
    if has_mask:
        mask = jnp.broadcast_to(attention_mask, (B, 1, 1, S)).astype(jnp.float32)
        in_specs.append(pl.BlockSpec((1, 1, 1, S), lambda b, l: (b, 0, 0, 0)))
        inputs.append(mask)
    in_specs += [_stacked_layer_spec(w) for w in weights]
    inputs += weights

    kernel = functools.partial(
        _encoder_kernel, num_heads=nh, head_size=hd,
        eps=config.layer_norm_eps, has_mask=has_mask, matmul_dtype=matmul_dtype)

    return pl.pallas_call(
        kernel,
        out_shape=jax.ShapeDtypeStruct((B, S, H), x.dtype),
        grid=(B, L),                       # batch (parallel) x layers (carry)
        in_specs=in_specs,
        out_specs=pl.BlockSpec((1, S, H), lambda b, l: (b, 0, 0)),
        scratch_shapes=[pltpu.VMEM((S, H), jnp.float32)],   # resident hidden
        compiler_params=pltpu.CompilerParams(
            dimension_semantics=("parallel", "arbitrary")),
    )(*inputs)


# ------------------------ deterministic params -------------------------------
def init_stacked_params(key, config):
    H = config.hidden_size
    I = config.intermediate_size
    L = config.num_hidden_layers
    s = 0.02

    def lin(k, din, dout):
        kw, kb = jax.random.split(k)
        # stored as (in, out) so the kernel computes x @ W + b (== torch x @ W.T + b)
        w = s * jax.random.normal(kw, (din, dout), jnp.float32)
        b = s * jax.random.normal(kb, (1, dout), jnp.float32)   # 2-D for clean layout
        return w, b

    layers = []
    for lk in jax.random.split(key, L):
        ks = jax.random.split(lk, 6)
        wq, bq = lin(ks[0], H, H)
        wk, bk = lin(ks[1], H, H)
        wv, bv = lin(ks[2], H, H)
        wo, bo = lin(ks[3], H, H)
        wi, bi = lin(ks[4], H, I)
        wo2, bo2 = lin(ks[5], I, H)
        layers.append(dict(
            wqkv=jnp.concatenate([wq, wk, wv], axis=1),     # (H, 3H) fused QKV
            bqkv=jnp.concatenate([bq, bk, bv], axis=1),     # (1, 3H)
            wo=wo, bo=bo,
            ln1_g=jnp.ones((1, H), jnp.float32), ln1_b=jnp.zeros((1, H), jnp.float32),
            wi=wi, bi=bi, wo2=wo2, bo2=bo2,
            ln2_g=jnp.ones((1, H), jnp.float32), ln2_b=jnp.zeros((1, H), jnp.float32),
        ))
    # stack over layers -> (L, ...) arrays for the layer grid axis
    return {k: jnp.stack([lp[k] for lp in layers], axis=0) for k in layers[0]}


# -------------------------------- main ---------------------------------------
if __name__ == "__main__":
    cfg = Config()
    B, S, H = 2, 8, cfg.hidden_size

    root = jax.random.PRNGKey(0)
    k_x, k_w = jax.random.split(root)

    x = jax.random.normal(k_x, (B, S, H), jnp.float32)
    params = init_stacked_params(k_w, cfg)

    # no-mask path (mask DMA and mask-add specialized away)
    out = bert_encoder_pallas(x, None, params, cfg)
    out = jax.block_until_ready(out)
    assert out.shape == (B, S, H) and out.dtype == jnp.float32

    # masked path with an all-zero additive mask must match the no-mask path
    zero_mask = jnp.zeros((B, 1, 1, S), jnp.float32)
    out_m = jax.block_until_ready(bert_encoder_pallas(x, zero_mask, params, cfg))
    assert out_m.shape == (B, S, H)
    assert jnp.allclose(out, out_m, atol=1e-5)

    print("KERNEL_OK")
</pallas_src>

<mosaic_0001>
module attributes {stable_mosaic.version = 11 : i64} {
  func.func @_encoder_kernel(%arg0: i32, %arg1: i32, %arg2: memref<1x8x32xf32, #tpu.memory_space<vmem>>, %arg3: memref<1x32x96xf32, #tpu.memory_space<vmem>>, %arg4: memref<1x1x96xf32, #tpu.memory_space<vmem>>, %arg5: memref<1x32x32xf32, #tpu.memory_space<vmem>>, %arg6: memref<1x1x32xf32, #tpu.memory_space<vmem>>, %arg7: memref<1x1x32xf32, #tpu.memory_space<vmem>>, %arg8: memref<1x1x32xf32, #tpu.memory_space<vmem>>, %arg9: memref<1x32x64xf32, #tpu.memory_space<vmem>>, %arg10: memref<1x1x64xf32, #tpu.memory_space<vmem>>, %arg11: memref<1x64x32xf32, #tpu.memory_space<vmem>>, %arg12: memref<1x1x32xf32, #tpu.memory_space<vmem>>, %arg13: memref<1x1x32xf32, #tpu.memory_space<vmem>>, %arg14: memref<1x1x32xf32, #tpu.memory_space<vmem>>, %arg15: memref<1x8x32xf32, #tpu.memory_space<vmem>>, %arg16: memref<8x32xf32, #tpu.memory_space<vmem>>) attributes {dimension_semantics = [#tpu.dimension_semantics<parallel>, #tpu.dimension_semantics<arbitrary>], iteration_bounds = array<i64: 2, 2>, scalar_prefetch = 0 : i64, scratch_operands = 1 : i64, tpu.core_type = #tpu.core_type<tc>, window_params = [{transform_indices = @transform_0, window_bounds = array<i64: 1, 8, 32>}, {transform_indices = @transform_1, window_bounds = array<i64: 1, 32, 96>}, {transform_indices = @transform_2, window_bounds = array<i64: 1, 1, 96>}, {transform_indices = @transform_3, window_bounds = array<i64: 1, 32, 32>}, {transform_indices = @transform_4, window_bounds = array<i64: 1, 1, 32>}, {transform_indices = @transform_5, window_bounds = array<i64: 1, 1, 32>}, {transform_indices = @transform_6, window_bounds = array<i64: 1, 1, 32>}, {transform_indices = @transform_7, window_bounds = array<i64: 1, 32, 64>}, {transform_indices = @transform_8, window_bounds = array<i64: 1, 1, 64>}, {transform_indices = @transform_9, window_bounds = array<i64: 1, 64, 32>}, {transform_indices = @transform_10, window_bounds = array<i64: 1, 1, 32>}, {transform_indices = @transform_11, window_bounds = array<i64: 1, 1, 32>}, {transform_indices = @transform_12, window_bounds = array<i64: 1, 1, 32>}, {transform_indices = @transform_13, window_bounds = array<i64: 1, 8, 32>}]} {
    %c0_i32 = arith.constant 0 : i32
    %0 = arith.cmpi eq, %arg1, %c0_i32 : i32
    %1 = arith.extui %0 : i1 to i32
    %c0_i32_0 = arith.constant 0 : i32
    %2 = arith.cmpi ne, %1, %c0_i32_0 : i32
    scf.if %2 {
      %c0_62 = arith.constant 0 : index
      %c0_63 = arith.constant 0 : index
      %c0_64 = arith.constant 0 : index
      %148 = vector.load %arg2[%c0_62, %c0_63, %c0_64] : memref<1x8x32xf32, #tpu.memory_space<vmem>>, vector<1x8x32xf32>
      %149 = vector.shape_cast %148 : vector<1x8x32xf32> to vector<8x32xf32>
      %c0_65 = arith.constant 0 : index
      %c0_66 = arith.constant 0 : index
      %150 = vector.load %arg16[%c0_65, %c0_66] : memref<8x32xf32, #tpu.memory_space<vmem>>, vector<8x32xf32>
      tpu.vector_store %arg16[%c0_65, %c0_66], %149 {strides = array<i32>} : memref<8x32xf32, #tpu.memory_space<vmem>>, vector<8x32xf32>,
    } else {
    }
    %c0 = arith.constant 0 : index
    %c0_1 = arith.constant 0 : index
    %3 = vector.load %arg16[%c0, %c0_1] : memref<8x32xf32, #tpu.memory_space<vmem>>, vector<8x32xf32>
    %c0_2 = arith.constant 0 : index
    %c0_3 = arith.constant 0 : index
    %c0_4 = arith.constant 0 : index
    %4 = vector.load %arg3[%c0_2, %c0_3, %c0_4] : memref<1x32x96xf32, #tpu.memory_space<vmem>>, vector<1x32x96xf32>
    %5 = vector.shape_cast %4 : vector<1x32x96xf32> to vector<32x96xf32>
    %cst = arith.constant dense<0.000000e+00> : vector<8x96xf32>
    %6 = tpu.matmul %3, %5, %cst {dimension_numbers = #tpu.dot_dimension_numbers<[1], [0], [0], [1], [0, 0, 1, 1], [], []>} : vector<8x32xf32>, vector<32x96xf32>, vector<8x96xf32> -> vector<8x96xf32>
    %c0_5 = arith.constant 0 : index
    %c0_6 = arith.constant 0 : index
    %c0_7 = arith.constant 0 : index
    %7 = vector.load %arg4[%c0_5, %c0_6, %c0_7] : memref<1x1x96xf32, #tpu.memory_space<vmem>>, vector<1x1x96xf32>
    %8 = vector.shape_cast %7 : vector<1x1x96xf32> to vector<1x96xf32>
    %9 = vector.broadcast %8 : vector<1x96xf32> to vector<8x96xf32>
    %10 = arith.addf %6, %9 : vector<8x96xf32>
    %11 = vector.extract_strided_slice %10 {offsets = [0, 0], sizes = [8, 8], strides = [1, 1]} : vector<8x96xf32> to vector<8x8xf32>
    %12 = vector.extract_strided_slice %10 {offsets = [0, 8], sizes = [8, 8], strides = [1, 1]} : vector<8x96xf32> to vector<8x8xf32>
    %13 = vector.extract_strided_slice %10 {offsets = [0, 16], sizes = [8, 8], strides = [1, 1]} : vector<8x96xf32> to vector<8x8xf32>
    %14 = vector.extract_strided_slice %10 {offsets = [0, 24], sizes = [8, 8], strides = [1, 1]} : vector<8x96xf32> to vector<8x8xf32>
    %15 = vector.shape_cast %11 : vector<8x8xf32> to vector<1x8x8xf32>
    %16 = vector.shape_cast %12 : vector<8x8xf32> to vector<1x8x8xf32>
    %17 = vector.shape_cast %13 : vector<8x8xf32> to vector<1x8x8xf32>
    %18 = vector.shape_cast %14 : vector<8x8xf32> to vector<1x8x8xf32>
    %19 = tpu.concatenate %15, %16, %17, %18 in 0 : vector<1x8x8xf32>, vector<1x8x8xf32>, vector<1x8x8xf32>, vector<1x8x8xf32> -> vector<4x8x8xf32>
    %20 = vector.extract_strided_slice %10 {offsets = [0, 32], sizes = [8, 8], strides = [1, 1]} : vector<8x96xf32> to vector<8x8xf32>
    %21 = vector.extract_strided_slice %10 {offsets = [0, 40], sizes = [8, 8], strides = [1, 1]} : vector<8x96xf32> to vector<8x8xf32>
    %22 = vector.extract_strided_slice %10 {offsets = [0, 48], sizes = [8, 8], strides = [1, 1]} : vector<8x96xf32> to vector<8x8xf32>
    %23 = vector.extract_strided_slice %10 {offsets = [0, 56], sizes = [8, 8], strides = [1, 1]} : vector<8x96xf32> to vector<8x8xf32>
    %24 = vector.shape_cast %20 : vector<8x8xf32> to vector<1x8x8xf32>
    %25 = vector.shape_cast %21 : vector<8x8xf32> to vector<1x8x8xf32>
    %26 = vector.shape_cast %22 : vector<8x8xf32> to vector<1x8x8xf32>
    %27 = vector.shape_cast %23 : vector<8x8xf32> to vector<1x8x8xf32>
    %28 = tpu.concatenate %24, %25, %26, %27 in 0 : vector<1x8x8xf32>, vector<1x8x8xf32>, vector<1x8x8xf32>, vector<1x8x8xf32> -> vector<4x8x8xf32>
    %29 = vector.extract_strided_slice %10 {offsets = [0, 64], sizes = [8, 8], strides = [1, 1]} : vector<8x96xf32> to vector<8x8xf32>
    %30 = vector.extract_strided_slice %10 {offsets = [0, 72], sizes = [8, 8], strides = [1, 1]} : vector<8x96xf32> to vector<8x8xf32>
    %31 = vector.extract_strided_slice %10 {offsets = [0, 80], sizes = [8, 8], strides = [1, 1]} : vector<8x96xf32> to vector<8x8xf32>
    %32 = vector.extract_strided_slice %10 {offsets = [0, 88], sizes = [8, 8], strides = [1, 1]} : vector<8x96xf32> to vector<8x8xf32>
    %33 = vector.shape_cast %29 : vector<8x8xf32> to vector<1x8x8xf32>
    %34 = vector.shape_cast %30 : vector<8x8xf32> to vector<1x8x8xf32>
    %35 = vector.shape_cast %31 : vector<8x8xf32> to vector<1x8x8xf32>
    %36 = vector.shape_cast %32 : vector<8x8xf32> to vector<1x8x8xf32>
    %37 = tpu.concatenate %33, %34, %35, %36 in 0 : vector<1x8x8xf32>, vector<1x8x8xf32>, vector<1x8x8xf32>, vector<1x8x8xf32> -> vector<4x8x8xf32>
    "tpu.trace_start"() <{level = 10 : i32, message = "hqd,hkd->hqk"}> : () -> ()
    %cst_8 = arith.constant dense<0.000000e+00> : vector<4x8x8xf32>
    %38 = tpu.matmul %19, %28, %cst_8 {dimension_numbers = #tpu.dot_dimension_numbers<[2], [2], [1], [1], [0, 0, 0, 1, 1, 1], [0], [0]>} : vector<4x8x8xf32>, vector<4x8x8xf32>, vector<4x8x8xf32> -> vector<4x8x8xf32>
    "tpu.trace_stop"() : () -> ()
    %cst_9 = arith.constant 0.353553385 : f32
    %39 = vector.broadcast %cst_9 : f32 to vector<4x8x8xf32>
    %40 = arith.mulf %38, %39 : vector<4x8x8xf32>
    %cst_10 = arith.constant dense<0xFF800000> : vector<4x8xf32>
    %41 = vector.multi_reduction <maximumf>, %40, %cst_10 [2] : vector<4x8x8xf32> to vector<4x8xf32>
    %42 = vector.shape_cast %41 : vector<4x8xf32> to vector<4x8x1xf32>
    %43 = vector.broadcast %42 : vector<4x8x1xf32> to vector<4x8x8xf32>
    %44 = arith.subf %40, %43 : vector<4x8x8xf32>
    %45 = math.exp %44 : vector<4x8x8xf32>
    %cst_11 = arith.constant dense<0.000000e+00> : vector<4x8xf32>
    %46 = vector.multi_reduction <add>, %45, %cst_11 [2] : vector<4x8x8xf32> to vector<4x8xf32>
    %47 = vector.shape_cast %46 : vector<4x8xf32> to vector<4x8x1xf32>
    %48 = tpu.reciprocal %47 {approx = true} : vector<4x8x1xf32> -> vector<4x8x1xf32>
    %49 = vector.broadcast %48 : vector<4x8x1xf32> to vector<4x8x8xf32>
    %50 = arith.mulf %45, %49 : vector<4x8x8xf32>
    "tpu.trace_start"() <{level = 10 : i32, message = "hqk,hkd->hqd"}> : () -> ()
    %cst_12 = arith.constant dense<0.000000e+00> : vector<4x8x8xf32>
    %51 = tpu.matmul %50, %37, %cst_12 {dimension_numbers = #tpu.dot_dimension_numbers<[2], [1], [1], [2], [0, 0, 0, 1, 1, 2], [0], [0]>} : vector<4x8x8xf32>, vector<4x8x8xf32>, vector<4x8x8xf32> -> vector<4x8x8xf32>
    "tpu.trace_stop"() : () -> ()
    %52 = vector.extract_strided_slice %51 {offsets = [0, 0, 0], sizes = [1, 8, 8], strides = [1, 1, 1]} : vector<4x8x8xf32> to vector<1x8x8xf32>
    %53 = vector.shape_cast %52 : vector<1x8x8xf32> to vector<8x8xf32>
    %54 = vector.extract_strided_slice %51 {offsets = [1, 0, 0], sizes = [1, 8, 8], strides = [1, 1, 1]} : vector<4x8x8xf32> to vector<1x8x8xf32>
    %55 = vector.shape_cast %54 : vector<1x8x8xf32> to vector<8x8xf32>
    %56 = vector.extract_strided_slice %51 {offsets = [2, 0, 0], sizes = [1, 8, 8], strides = [1, 1, 1]} : vector<4x8x8xf32> to vector<1x8x8xf32>
    %57 = vector.shape_cast %56 : vector<1x8x8xf32> to vector<8x8xf32>
    %58 = vector.extract_strided_slice %51 {offsets = [3, 0, 0], sizes = [1, 8, 8], strides = [1, 1, 1]} : vector<4x8x8xf32> to vector<1x8x8xf32>
    %59 = vector.shape_cast %58 : vector<1x8x8xf32> to vector<8x8xf32>
    %60 = tpu.concatenate %53, %55, %57, %59 in 1 : vector<8x8xf32>, vector<8x8xf32>, vector<8x8xf32>, vector<8x8xf32> -> vector<8x32xf32>
    %c0_13 = arith.constant 0 : index
    %c0_14 = arith.constant 0 : index
    %c0_15 = arith.constant 0 : index
    %61 = vector.load %arg5[%c0_13, %c0_14, %c0_15] : memref<1x32x32xf32, #tpu.memory_space<vmem>>, vector<1x32x32xf32>
    %62 = vector.shape_cast %61 : vector<1x32x32xf32> to vector<32x32xf32>
    %cst_16 = arith.constant dense<0.000000e+00> : vector<8x32xf32>
    %63 = tpu.matmul %60, %62, %cst_16 {dimension_numbers = #tpu.dot_dimension_numbers<[1], [0], [0], [1], [0, 0, 1, 1], [], []>} : vector<8x32xf32>, vector<32x32xf32>, vector<8x32xf32> -> vector<8x32xf32>
    %c0_17 = arith.constant 0 : index
    %c0_18 = arith.constant 0 : index
    %c0_19 = arith.constant 0 : index
    %64 = vector.load %arg6[%c0_17, %c0_18, %c0_19] : memref<1x1x32xf32, #tpu.memory_space<vmem>>, vector<1x1x32xf32>
    %65 = vector.shape_cast %64 : vector<1x1x32xf32> to vector<1x32xf32>
    %66 = vector.broadcast %65 : vector<1x32xf32> to vector<8x32xf32>
    %67 = arith.addf %63, %66 : vector<8x32xf32>
    %68 = arith.addf %67, %3 : vector<8x32xf32>
    %c0_20 = arith.constant 0 : index
    %c0_21 = arith.constant 0 : index
    %c0_22 = arith.constant 0 : index
    %69 = vector.load %arg7[%c0_20, %c0_21, %c0_22] : memref<1x1x32xf32, #tpu.memory_space<vmem>>, vector<1x1x32xf32>
    %70 = vector.shape_cast %69 : vector<1x1x32xf32> to vector<1x32xf32>
    %c0_23 = arith.constant 0 : index
    %c0_24 = arith.constant 0 : index
    %c0_25 = arith.constant 0 : index
    %71 = vector.load %arg8[%c0_23, %c0_24, %c0_25] : memref<1x1x32xf32, #tpu.memory_space<vmem>>, vector<1x1x32xf32>
    %72 = vector.shape_cast %71 : vector<1x1x32xf32> to vector<1x32xf32>
    %cst_26 = arith.constant dense<0.000000e+00> : vector<8xf32>
    %73 = vector.multi_reduction <add>, %68, %cst_26 [1] : vector<8x32xf32> to vector<8xf32>
    %74 = vector.shape_cast %73 : vector<8xf32> to vector<8x1xf32>
    %cst_27 = arith.constant 3.200000e+01 : f32
    %75 = vector.broadcast %cst_27 : f32 to vector<8x1xf32>
    %76 = arith.divf %74, %75 : vector<8x1xf32>
    %77 = vector.broadcast %76 : vector<8x1xf32> to vector<8x32xf32>
    %78 = arith.subf %68, %77 : vector<8x32xf32>
    %79 = arith.mulf %78, %78 : vector<8x32xf32>
    %cst_28 = arith.constant dense<0.000000e+00> : vector<8xf32>
    %80 = vector.multi_reduction <add>, %79, %cst_28 [1] : vector<8x32xf32> to vector<8xf32>
    %81 = vector.shape_cast %80 : vector<8xf32> to vector<8x1xf32>
    %cst_29 = arith.constant 3.200000e+01 : f32
    %82 = vector.broadcast %cst_29 : f32 to vector<8x1xf32>
    %83 = arith.divf %81, %82 : vector<8x1xf32>
    %cst_30 = arith.constant 9.99999996E-13 : f32
    %84 = vector.broadcast %cst_30 : f32 to vector<8x1xf32>
    %85 = arith.addf %83, %84 : vector<8x1xf32>
    %86 = math.rsqrt %85 : vector<8x1xf32>
    %87 = vector.broadcast %76 : vector<8x1xf32> to vector<8x32xf32>
    %88 = arith.subf %68, %87 : vector<8x32xf32>
    %89 = vector.broadcast %86 : vector<8x1xf32> to vector<8x32xf32>
    %90 = arith.mulf %88, %89 : vector<8x32xf32>
    %91 = vector.broadcast %70 : vector<1x32xf32> to vector<8x32xf32>
    %92 = arith.mulf %90, %91 : vector<8x32xf32>
    %93 = vector.broadcast %72 : vector<1x32xf32> to vector<8x32xf32>
    %94 = arith.addf %92, %93 : vector<8x32xf32>
    %c0_31 = arith.constant 0 : index
    %c0_32 = arith.constant 0 : index
    %c0_33 = arith.constant 0 : index
    %95 = vector.load %arg9[%c0_31, %c0_32, %c0_33] : memref<1x32x64xf32, #tpu.memory_space<vmem>>, vector<1x32x64xf32>
    %96 = vector.shape_cast %95 : vector<1x32x64xf32> to vector<32x64xf32>
    %cst_34 = arith.constant dense<0.000000e+00> : vector<8x64xf32>
    %97 = tpu.matmul %94, %96, %cst_34 {dimension_numbers = #tpu.dot_dimension_numbers<[1], [0], [0], [1], [0, 0, 1, 1], [], []>} : vector<8x32xf32>, vector<32x64xf32>, vector<8x64xf32> -> vector<8x64xf32>
    %c0_35 = arith.constant 0 : index
    %c0_36 = arith.constant 0 : index
    %c0_37 = arith.constant 0 : index
    %98 = vector.load %arg10[%c0_35, %c0_36, %c0_37] : memref<1x1x64xf32, #tpu.memory_space<vmem>>, vector<1x1x64xf32>
    %99 = vector.shape_cast %98 : vector<1x1x64xf32> to vector<1x64xf32>
    %100 = vector.broadcast %99 : vector<1x64xf32> to vector<8x64xf32>
    %101 = arith.addf %97, %100 : vector<8x64xf32>
    %cst_38 = arith.constant 5.000000e-01 : f32
    %102 = vector.broadcast %cst_38 : f32 to vector<8x64xf32>
    %103 = arith.mulf %101, %102 : vector<8x64xf32>
    %cst_39 = arith.constant 0.707106769 : f32
    %104 = vector.broadcast %cst_39 : f32 to vector<8x64xf32>
    %105 = arith.mulf %101, %104 : vector<8x64xf32>
    %106 = math.erf %105 : vector<8x64xf32>
    %cst_40 = arith.constant 1.000000e+00 : f32
    %107 = vector.broadcast %cst_40 : f32 to vector<8x64xf32>
    %108 = arith.addf %107, %106 : vector<8x64xf32>
    %109 = arith.mulf %103, %108 : vector<8x64xf32>
    %c0_41 = arith.constant 0 : index
    %c0_42 = arith.constant 0 : index
    %c0_43 = arith.constant 0 : index
    %110 = vector.load %arg11[%c0_41, %c0_42, %c0_43] : memref<1x64x32xf32, #tpu.memory_space<vmem>>, vector<1x64x32xf32>
    %111 = vector.shape_cast %110 : vector<1x64x32xf32> to vector<64x32xf32>
    %cst_44 = arith.constant dense<0.000000e+00> : vector<8x32xf32>
    %112 = tpu.matmul %109, %111, %cst_44 {dimension_numbers = #tpu.dot_dimension_numbers<[1], [0], [0], [1], [0, 0, 1, 1], [], []>} : vector<8x64xf32>, vector<64x32xf32>, vector<8x32xf32> -> vector<8x32xf32>
    %c0_45 = arith.constant 0 : index
    %c0_46 = arith.constant 0 : index
    %c0_47 = arith.constant 0 : index
    %113 = vector.load %arg12[%c0_45, %c0_46, %c0_47] : memref<1x1x32xf32, #tpu.memory_space<vmem>>, vector<1x1x32xf32>
    %114 = vector.shape_cast %113 : vector<1x1x32xf32> to vector<1x32xf32>
    %115 = vector.broadcast %114 : vector<1x32xf32> to vector<8x32xf32>
    %116 = arith.addf %112, %115 : vector<8x32xf32>
    %117 = arith.addf %116, %94 : vector<8x32xf32>
    %c0_48 = arith.constant 0 : index
    %c0_49 = arith.constant 0 : index
    %c0_50 = arith.constant 0 : index
    %118 = vector.load %arg13[%c0_48, %c0_49, %c0_50] : memref<1x1x32xf32, #tpu.memory_space<vmem>>, vector<1x1x32xf32>
    %119 = vector.shape_cast %118 : vector<1x1x32xf32> to vector<1x32xf32>
    %c0_51 = arith.constant 0 : index
    %c0_52 = arith.constant 0 : index
    %c0_53 = arith.constant 0 : index
    %120 = vector.load %arg14[%c0_51, %c0_52, %c0_53] : memref<1x1x32xf32, #tpu.memory_space<vmem>>, vector<1x1x32xf32>
    %121 = vector.shape_cast %120 : vector<1x1x32xf32> to vector<1x32xf32>
    %cst_54 = arith.constant dense<0.000000e+00> : vector<8xf32>
    %122 = vector.multi_reduction <add>, %117, %cst_54 [1] : vector<8x32xf32> to vector<8xf32>
    %123 = vector.shape_cast %122 : vector<8xf32> to vector<8x1xf32>
    %cst_55 = arith.constant 3.200000e+01 : f32
    %124 = vector.broadcast %cst_55 : f32 to vector<8x1xf32>
    %125 = arith.divf %123, %124 : vector<8x1xf32>
    %126 = vector.broadcast %125 : vector<8x1xf32> to vector<8x32xf32>
    %127 = arith.subf %117, %126 : vector<8x32xf32>
    %128 = arith.mulf %127, %127 : vector<8x32xf32>
    %cst_56 = arith.constant dense<0.000000e+00> : vector<8xf32>
    %129 = vector.multi_reduction <add>, %128, %cst_56 [1] : vector<8x32xf32> to vector<8xf32>
    %130 = vector.shape_cast %129 : vector<8xf32> to vector<8x1xf32>
    %cst_57 = arith.constant 3.200000e+01 : f32
    %131 = vector.broadcast %cst_57 : f32 to vector<8x1xf32>
    %132 = arith.divf %130, %131 : vector<8x1xf32>
    %cst_58 = arith.constant 9.99999996E-13 : f32
    %133 = vector.broadcast %cst_58 : f32 to vector<8x1xf32>
    %134 = arith.addf %132, %133 : vector<8x1xf32>
    %135 = math.rsqrt %134 : vector<8x1xf32>
    %136 = vector.broadcast %125 : vector<8x1xf32> to vector<8x32xf32>
    %137 = arith.subf %117, %136 : vector<8x32xf32>
    %138 = vector.broadcast %135 : vector<8x1xf32> to vector<8x32xf32>
    %139 = arith.mulf %137, %138 : vector<8x32xf32>
    %140 = vector.broadcast %119 : vector<1x32xf32> to vector<8x32xf32>
    %141 = arith.mulf %139, %140 : vector<8x32xf32>
    %142 = vector.broadcast %121 : vector<1x32xf32> to vector<8x32xf32>
    %143 = arith.addf %141, %142 : vector<8x32xf32>
    %c0_59 = arith.constant 0 : index
    %c0_60 = arith.constant 0 : index
    %144 = vector.load %arg16[%c0_59, %c0_60] : memref<8x32xf32, #tpu.memory_space<vmem>>, vector<8x32xf32>
    tpu.vector_store %arg16[%c0_59, %c0_60], %143 {strides = array<i32>} : memref<8x32xf32, #tpu.memory_space<vmem>>, vector<8x32xf32>,
    %c1_i32 = arith.constant 1 : i32
    %145 = arith.cmpi eq, %arg1, %c1_i32 : i32
    %146 = arith.extui %145 : i1 to i32
    %c0_i32_61 = arith.constant 0 : i32
    %147 = arith.cmpi ne, %146, %c0_i32_61 : i32
    scf.if %147 {
      %c0_62 = arith.constant 0 : index
      %c0_63 = arith.constant 0 : index
      %c0_64 = arith.constant 0 : index
      %148 = vector.load %arg15[%c0_62, %c0_63, %c0_64] : memref<1x8x32xf32, #tpu.memory_space<vmem>>, vector<1x8x32xf32>
      %149 = vector.shape_cast %148 : vector<1x8x32xf32> to vector<8x32xf32>
      %150 = vector.shape_cast %143 : vector<8x32xf32> to vector<1x8x32xf32>
      tpu.vector_store %arg15[%c0_62, %c0_63, %c0_64], %150 {strides = array<i32>} : memref<1x8x32xf32, #tpu.memory_space<vmem>>, vector<1x8x32xf32>,
    } else {
    }
    return
  }
  func.func @transform_0(%arg0: i32, %arg1: i32) -> (i32, i32, i32) {
    %c0_i32 = arith.constant 0 : i32
    %c0_i32_0 = arith.constant 0 : i32
    %c0_i32_1 = arith.constant 0 : i32
    return %arg0, %c0_i32, %c0_i32_0 : i32, i32, i32
  }
  func.func @transform_1(%arg0: i32, %arg1: i32) -> (i32, i32, i32) {
    %c0_i32 = arith.constant 0 : i32
    %c0_i32_0 = arith.constant 0 : i32
    %c0_i32_1 = arith.constant 0 : i32
    return %arg1, %c0_i32, %c0_i32_0 : i32, i32, i32
  }
  func.func @transform_2(%arg0: i32, %arg1: i32) -> (i32, i32, i32) {
    %c0_i32 = arith.constant 0 : i32
    %c0_i32_0 = arith.constant 0 : i32
    %c0_i32_1 = arith.constant 0 : i32
    return %arg1, %c0_i32, %c0_i32_0 : i32, i32, i32
  }
  func.func @transform_3(%arg0: i32, %arg1: i32) -> (i32, i32, i32) {
    %c0_i32 = arith.constant 0 : i32
    %c0_i32_0 = arith.constant 0 : i32
    %c0_i32_1 = arith.constant 0 : i32
    return %arg1, %c0_i32, %c0_i32_0 : i32, i32, i32
  }
  func.func @transform_4(%arg0: i32, %arg1: i32) -> (i32, i32, i32) {
    %c0_i32 = arith.constant 0 : i32
    %c0_i32_0 = arith.constant 0 : i32
    %c0_i32_1 = arith.constant 0 : i32
    return %arg1, %c0_i32, %c0_i32_0 : i32, i32, i32
  }
  func.func @transform_5(%arg0: i32, %arg1: i32) -> (i32, i32, i32) {
    %c0_i32 = arith.constant 0 : i32
    %c0_i32_0 = arith.constant 0 : i32
    %c0_i32_1 = arith.constant 0 : i32
    return %arg1, %c0_i32, %c0_i32_0 : i32, i32, i32
  }
  func.func @transform_6(%arg0: i32, %arg1: i32) -> (i32, i32, i32) {
    %c0_i32 = arith.constant 0 : i32
    %c0_i32_0 = arith.constant 0 : i32
    %c0_i32_1 = arith.constant 0 : i32
    return %arg1, %c0_i32, %c0_i32_0 : i32, i32, i32
  }
  func.func @transform_7(%arg0: i32, %arg1: i32) -> (i32, i32, i32) {
    %c0_i32 = arith.constant 0 : i32
    %c0_i32_0 = arith.constant 0 : i32
    %c0_i32_1 = arith.constant 0 : i32
    return %arg1, %c0_i32, %c0_i32_0 : i32, i32, i32
  }
  func.func @transform_8(%arg0: i32, %arg1: i32) -> (i32, i32, i32) {
    %c0_i32 = arith.constant 0 : i32
    %c0_i32_0 = arith.constant 0 : i32
    %c0_i32_1 = arith.constant 0 : i32
    return %arg1, %c0_i32, %c0_i32_0 : i32, i32, i32
  }
  func.func @transform_9(%arg0: i32, %arg1: i32) -> (i32, i32, i32) {
    %c0_i32 = arith.constant 0 : i32
    %c0_i32_0 = arith.constant 0 : i32
    %c0_i32_1 = arith.constant 0 : i32
    return %arg1, %c0_i32, %c0_i32_0 : i32, i32, i32
  }
  func.func @transform_10(%arg0: i32, %arg1: i32) -> (i32, i32, i32) {
    %c0_i32 = arith.constant 0 : i32
    %c0_i32_0 = arith.constant 0 : i32
    %c0_i32_1 = arith.constant 0 : i32
    return %arg1, %c0_i32, %c0_i32_0 : i32, i32, i32
  }
  func.func @transform_11(%arg0: i32, %arg1: i32) -> (i32, i32, i32) {
    %c0_i32 = arith.constant 0 : i32
    %c0_i32_0 = arith.constant 0 : i32
    %c0_i32_1 = arith.constant 0 : i32
    return %arg1, %c0_i32, %c0_i32_0 : i32, i32, i32
  }
  func.func @transform_12(%arg0: i32, %arg1: i32) -> (i32, i32, i32) {
    %c0_i32 = arith.constant 0 : i32
    %c0_i32_0 = arith.constant 0 : i32
    %c0_i32_1 = arith.constant 0 : i32
    return %arg1, %c0_i32, %c0_i32_0 : i32, i32, i32
  }
  func.func @transform_13(%arg0: i32, %arg1: i32) -> (i32, i32, i32) {
    %c0_i32 = arith.constant 0 : i32
    %c0_i32_0 = arith.constant 0 : i32
    %c0_i32_1 = arith.constant 0 : i32
    return %arg0, %c0_i32, %c0_i32_0 : i32, i32, i32
  }
}

</mosaic_0001>

<bundles_post_ra>
// kernel: tpu_custom_call.1
= control target key start
LH: loop header
LB: loop body
LE: loop exit
PB: predicated region body
PF: predicated region fallthrough
CT: control target
= control target key end

     0   :  { %s2467_s0 = inlined_call_operand.hbm [shape: f32[2,8,32], index: 0, kind: input, shape index: {}]   ;;  %s2468_s1 = inlined_call_operand.vmem [shape: f32[2,32,96], index: 1, kind: input, shape index: {}]   ;;  %s2469_s2 = inlined_call_operand.hbm [shape: f32[2,1,96], index: 2, kind: input, shape index: {}]   ;;  %s2470_s3 = inlined_call_operand.vmem [shape: f32[2,32,32], index: 3, kind: input, shape index: {}]   ;;  %s2471_s4 = inlined_call_operand.vmem [shape: f32[2,1,32], index: 4, kind: input, shape index: {}]   ;;  %s2472_s5 = inlined_call_operand.hbm [shape: f32[2,1,32], index: 5, kind: input, shape index: {}]   ;;  %s2473_s6 = inlined_call_operand.vmem [shape: f32[2,1,32], index: 6, kind: input, shape index: {}]   ;;  %s2474_s7 = inlined_call_operand.vmem [shape: f32[2,32,64], index: 7, kind: input, shape index: {}]   ;;  %s2475_s8 = inlined_call_operand.hbm [shape: f32[2,1,64], index: 8, kind: input, shape index: {}]   ;;  %s2476_s9 = inlined_call_operand.vmem [shape: f32[2,64,32], index: 9, kind: input, shape index: {}]   ;;  %s2477_s10 = inlined_call_operand.vmem [shape: f32[2,1,32], index: 10, kind: input, shape index: {}]   ;;  %s2478_s11 = inlined_call_operand.vmem [shape: f32[2,1,32], index: 11, kind: input, shape index: {}]   ;;  %s2479_s12 = inlined_call_operand.vmem [shape: f32[2,1,32], index: 12, kind: input, shape index: {}]   ;;  %s2480_s13 = inlined_call_operand.hbm [shape: f32[2,8,32], index: 13, kind: output, shape index: {}]  }
   0x1   :  { %2494 = sst [smem:[#allocation29_spill]] %s2467_s0 }
   0x2   :  { %2495 = sst [smem:[#allocation30_spill]] %s2468_s1 }
   0x3   :  { %2496 = sst [smem:[#allocation31_spill]] %s2469_s2 }
   0x4   :  { %2497 = sst [smem:[#allocation32_spill]] %s2470_s3 }
   0x5   :  { %2498 = sst [smem:[#allocation33_spill]] %s2472_s5 }
   0x6   :  { %2499 = sst [smem:[#allocation34_spill]] %s2473_s6 }
   0x7   :  { %2500 = sst [smem:[#allocation35_spill]] %s2474_s7 }
   0x8   :  { %2501 = sst [smem:[#allocation36_spill]] %s2475_s8 }
   0x9   :  { %2502 = sst [smem:[#allocation37_spill]] %s2476_s9 }
   0xa   :  { %2503 = sst [smem:[#allocation38_spill]] %s2477_s10 }
   0xb   :  { %2504 = sst [smem:[#allocation39_spill]] %s2478_s11 }
   0xc   :  { %2505 = sst [smem:[#allocation40_spill]] %s2479_s12 }
   0xd   :  { %2506 = sst [smem:[#allocation41_spill]] %s2480_s13 }
   0xe   :  { %18 = vsyncpa [#allocation4], 0 }
   0xf   :  { %20 = vsyncpa [#allocation4 + $0x1], 0 }
  0x10   :  { %21 = vsyncpa [#allocation7], 0 }
  0x11   :  { %23 = vsyncpa [#allocation7 + $0x1], 0 }
  0x12   :  { %24 = vsyncpa [#allocation10], 0 }
  0x13   :  { %26 = vsyncpa [#allocation10 + $0x1], 0 }
  0x14   :  { %27 = vsyncpa [#allocation5], 0 }
  0x15   :  { %29 = vsyncpa [#allocation5 + $0x1], 0  ;;  %s2046_s25 = smov 0   ;;  %s2048_s26 = smov 0  }
  0x16   :  { %s2050_s27 = smov 0   ;;  %s2052_s28 = smov 0  }
  0x17   :  { %s2054_s29 = smov 0   ;;  %s2056_s30 = smov 0  }
  0x18   :  { %s2058_s14 = smov 0   ;;  %s2060_s15 = smov 0  }
  0x19   :  { %s2062_s16 = smov 0   ;;  %s2064_s17 = smov 0  }
  0x1a   :  { %s2066_s18 = smov 0  }
  0x1b LB: > { %2507 = sst [smem:[#allocation16_spill]] %s1933_s27  ;;  %s2100_s19 = sadd.s32 4294967295, %s1965_s18   ;;  %s1965_s18 = sphi %s2066_s18, %s35_s18   ;;  %s1961_s17 = sphi %s2064_s17, %s2564_s17   ;;  %s1957_s16 = sphi %s2062_s16, %s2563_s16   ;;  %s1953_s15 = sphi %s2060_s15, %s2562_s15   ;;  %s1949_s14 = sphi %s2058_s14, %s2561_s14   ;;  %s1945_s30 = sphi %s2056_s30, %s2560_s30   ;;  %s1941_s29 = sphi %s2054_s29, %s2559_s29   ;;  %s1937_s28 = sphi %s2052_s28, %s2558_s28   ;;  %s1933_s27 = sphi %s2050_s27, %s2557_s27   ;;  %s1929_s26 = sphi %s2048_s26, %s2566_s26   ;;  %s1925_s25 = sphi %s2046_s25, %s2565_s25  }
  0x1c   : > { %2508 = sst [smem:[#allocation17_spill]] %s1937_s28  ;;  %s44_s20 = sadd.s32 1, %s1957_s16 }
  0x1d   : > { %2509 = sst [smem:[#allocation18_spill]] %s1941_s29  ;;  %p2103_p0 = scmp.ge.s32.totalorder %s44_s20, 2 }
  0x1e   : > { %2510 = sst [smem:[#allocation19_spill]] %s1945_s30  ;;  %p62_p1 = scmp.eq.s32.totalorder %s1965_s18, 0 }
  0x1f   : > { %2511 = sst [smem:[#allocation20_spill]] %s1953_s15  ;;  %p68_p2 = scmp.eq.s32.totalorder %s2100_s19, 0 }
  0x20   : > { %2512 = sst [smem:[#allocation21_spill]] %s1957_s16  ;;  %s106_s22 = sadd.s32 1, %s1933_s27 }
  0x21   : > { %2513 = sst [smem:[#allocation22_spill]] %s1961_s17  ;;  %s2568_s20 = smov (%p2103_p0, %s44_s20), 0 }
  0x22   : > { %2515 = sst [smem:[#allocation23_spill]] %s2568_s20  ;;  %p113_p3 = scmp.ne.s32.totalorder %s1933_s27, %s1929_s26 }
  0x23   : > { %p119_p4 = scmp.ne.s32.totalorder %s1929_s26, %s1925_s25  ;;  %s103_s23 = ssub.s32 %s1957_s16, %s2568_s20 }
  0x24   : > { %p104_p5 = scmp.eq.s32.totalorder %s103_s23, 0  ;;  %p115_p6 = por %p113_p3, %p62_p1 }
  0x25   : > { %p2123_p7 = por %p119_p4, %p68_p2  ;;  %p1579_p8 = scmp.lt.s32.totalorder %s1965_s18, 4 }
  0x26   : > { %s2129_s13 = scalar_select %p104_p5, %s1933_s27, %s106_s22  }
  0x27   : > { %s456_s15 = sand.u32 1, %s1965_s18   ;;  %s2133_s25 = sand.u32 1, %s1933_s27  }
  0x28   : > { %2517 = sst [smem:[#allocation24_spill]] %s2129_s13  ;;  %s459_s11 = scalar_lea.vmem [#allocation6], %s2133_s25 }
  0x29   : > { %s2518_s2 = sld [smem:[#allocation31_spill]]  ;;  %s466_s9 = sshll.u32 %s459_s11, 4  ;;  %s467_s9 = int_to_ptr.vmem [resolvable:$true] %s466_s9 }
  0x2a   : > { %p2142_p9 = pnand %p1579_p8, %p115_p6  ;;  %p1514_p10 = scmp.ge.s32.totalorder %s1965_s18, 1 }
  0x2b   : > { %p559_p11 = scmp.lt.s32.totalorder %s1965_s18, 5  ;;  %s2148_s12 = scalar_lea.sflag [#allocation7], %s456_s15 }
  0x2c   : > { %s1509_s20 = sadd.s32 4294967294, %s1965_s18   ;;  %p61_p13 = scmp.ne.s32.totalorder %s1945_s30, %s1941_s29 }
  0x2d   : > { %p2153_p12 = pnand %p1514_p10, %p559_p11  ;;  %p67_p4 = scmp.ne.s32.totalorder %s1941_s29, %s1937_s28 }
  0x2e   : > { %p2169_p5 = por %p62_p1, %p61_p13  ;;  %p403_p6 = scmp.eq.s32.totalorder %s2100_s19, 3 }
  0x2f   : > { %s462_s23 = scalar_lea.hbm %s2518_s2, %s1957_s16  ;;  %s54_s2 = sadd.s32 1, %s1945_s30 }
  0x30   : > { %s464_s22 = sshll.u32 %s462_s23, 4  ;;  %s47_s23 = sadd.s32 1, %s1961_s17  ;;  %s465_s22 = int_to_ptr.hbm [resolvable:$true] %s464_s22 }
  0x31   : > { %1568 = dma.hbm_to_vmem [thread:$0]  (!%p2142_p9), %s465_s22, 16, %s467_s9, %s2148_s12  }
  0x32   : > { %s2570_s23 = smov (!%p2103_p0, %s47_s23), %s1961_s17  ;;  %p2178_p10 = por %p68_p2, %p67_p4 }
  0x33   : > { %p49_p3 = scmp.ge.s32.totalorder %s2570_s23, 2  ;;  %p2182_p0 = por %p403_p6, %p61_p13 }
  0x34   : > { %p409_p1 = scmp.eq.s32.totalorder %s1509_s20, 3  ;;  %s429_s27 = sand.u32 1, %s1945_s30  }
  0x35   : > { %s2572_s23 = smov (%p49_p3, %s2570_s23), 0  ;;  %s1512_s7 = sshll.u32 %s429_s27, 3 }
  0x36   : > { %2522 = sst [smem:[#allocation25_spill]] %s2572_s23  ;;  %s51_s22 = ssub.s32 %s1961_s17, %s2572_s23 }
  0x37   : > { %s2524_s21 = scalar_select %p2182_p0, 1, 0 }
  0x38   : > { %p52_p11 = scmp.eq.s32.totalorder %s51_s22, 0  ;;  %p2189_p3 = por %p409_p1, %p67_p4 }
  0x39   : > { %2525 = sst [smem:[#allocation26_spill]] %s2524_s21  ;;  %s1513_s6 = sshll.u32 %s1961_s17, 3 }
  0x3a   : > { %s2526_s28 = scalar_select %p2189_p3, 1, 0 }
  0x3b   : > { %s2194_s10 = scalar_select %p52_p11, %s1945_s30, %s54_s2  }
  0x3c   : > { %2527 = sst [smem:[#allocation27_spill]] %s2526_s28  ;;  %s433_s20 = scalar_lea.vmem [#allocation3], %s1512_s7 }
  0x3d   : > { %2528 = sst [smem:[#allocation28_spill]] %s2194_s10  ;;  %s441_s22 = sshll.u32 %s433_s20, 4  ;;  %s442_s22 = int_to_ptr.vmem [resolvable:$true] %s441_s22 }
  0x3e   : > { %s2529_s0 = sld [smem:[#allocation29_spill]]  ;;  %p1563_p2 = pnand %p1579_p8, %p2169_p5 }
  0x3f   : > { %s2530_s5 = sld [smem:[#allocation33_spill]]  ;;  %s490_s1 = scalar_lea.vmem [#allocation8], %s2133_s25 }
  0x40   : > { %s497_s3 = sshll.u32 %s490_s1, 4  ;;  %s2531_s8 = sld [smem:[#allocation36_spill]]  ;;  %s498_s3 = int_to_ptr.vmem [resolvable:$true] %s497_s3 }
  0x41   : > { %s521_s20 = scalar_lea.vmem [#allocation9], %s2133_s25  ;;  %s519_s10 = scalar_lea.sflag [#allocation10], %s2133_s25 }
  0x44   : > { %s437_s21 = scalar_lea.hbm %s2529_s0, %s1513_s6  ;;  %s430_s6 = scalar_lea.sflag [#allocation4], %s429_s27 }
  0x45   : > { %s439_s23 = sshll.u32 %s437_s21, 4  ;;  %s493_s17 = scalar_lea.hbm %s2530_s5, %s1957_s16  ;;  %s440_s23 = int_to_ptr.hbm [resolvable:$true] %s439_s23 }
  0x46   : > { %s495_s30 = sshll.u32 %s493_s17, 4  ;;  %s524_s15 = scalar_lea.hbm %s2531_s8, %s1957_s16  ;;  %s496_s30 = int_to_ptr.hbm [resolvable:$true] %s495_s30 }
  0x47   : > { %1565 = dma.hbm_to_vmem [thread:$0]  (!%p1563_p2), %s440_s23, 128, %s442_s22, %s430_s6  }
  0x48   : > { %1571 = dma.hbm_to_vmem [thread:$0]  (!%p2142_p9), %s496_s30, 16, %s498_s3, %s2148_s12  }
  0x49   : > { %s528_s0 = sshll.u32 %s521_s20, 4  ;;  %s526_s28 = sshll.u32 %s524_s15, 4  ;;  %s529_s0 = int_to_ptr.vmem [resolvable:$true] %s528_s0  ;;  %s527_s28 = int_to_ptr.hbm [resolvable:$true] %s526_s28 }
  0x4a   : > { %1574 = dma.hbm_to_vmem [thread:$0]  (!%p2142_p9), %s527_s28, 16, %s529_s0, %s519_s10  }
  0x4b   : > { %563 = sbr.rel (%p2153_p12) target bundleno = 2144 (0x860), region = 72  ;;  %s2223_s27 = sand.u32 (!%p2153_p12), 1, %s1941_s29  }
  0x4c   : > { %s2491_s30 = sshll.u32 (!%p2153_p12), %s2223_s27, 3  ;;  %s566_s17 = scalar_lea.sflag (!%p2153_p12), [#allocation4], %s2223_s27 }
  0x4d   : > { %s569_s12 = scalar_lea.vmem (!%p2153_p12), [#allocation3], %s2491_s30 }
  0x50   : > { %1908 = dma.done.wait (%p2178_p10), %s566_s17, 128  }
  0x51   : > { %1910 = vsyncadd (%p2178_p10), %s566_s17, 4294967168  ;;  %s575_s0 = sand.u32 1, %s2100_s19   ;;  %s2235_s13 = sand.u32 1, %s1929_s26  }
  0x52   : > { %s576_s28 = scalar_lea.sflag [#allocation7], %s575_s0 }
  0x53   : > { %1912 = dma.done.wait (%p2123_p7), %s576_s28, 32  }
  0x54   : > { %1914 = vsyncadd (%p2123_p7), %s576_s28, 4294967264  ;;  %s594_s23 = scalar_lea.sflag [#allocation10], %s2235_s13 }
  0x55   : > { %1916 = dma.done.wait (%p2123_p7), %s594_s23, 16  }
  0x56   : > { %1918 = vsyncadd (%p2123_p7), %s594_s23, 4294967280  ;;  %p687_p8 = scmp.lt.s32.totalorder %s1949_s14, 1  ;;  %s2532_s7 = sld [smem:[#allocation30_spill]] }
  0x57   : > { %s2533_s10 = sld [smem:[#allocation32_spill]]  ;;  %p1525_p7 = scmp.ne.s32.totalorder %s1949_s14, 0 }
  0x58   : > { %s2251_s19 = scalar_select %p687_p8, %s1949_s14, 1 }
  0x59   : > { %s2535_s30 = sld [smem:[#allocation35_spill]] }
  0x5a   : > { %s1548_s22 = sshll.u32 %s2251_s19, 5  ;;  %s1551_s2 = sshll.u32 %s2251_s19, 6 }
  0x5b   : > { %s2536_s8 = sld [smem:[#allocation38_spill]] }
  0x5c   : > { %s691_s21 = scalar_lea.vmem %s2532_s7, %s1548_s22  ;;  %s2537_s16 = sld [smem:[#allocation37_spill]] }
  0x5d   : > { %s2264_s17 = scalar_lea.vmem %s2533_s10, %s1548_s22  ;;  %s2538_s29 = sld [smem:[#allocation39_spill]] }
  0x5e   : > { %s2539_s9 = sld [smem:[#allocation40_spill]] }
  0x5f   : > { %s2273_s5 = scalar_lea.vmem %s2535_s30, %s1548_s22  ;;  %s2540_s30 = sshll.u32 %s2223_s27, 3 }
  0x60   : > { %s2295_s11 = scalar_lea.vmem [#allocation11], %s2540_s30  ;;  %725 = sbr.rel (%p1525_p7) target bundleno = 103 (0x67), region = 92 }
  0x61   : > { %s715_s24 = scalar_lea.vmem %s2536_s8, %s2251_s19 }
  0x62   : > { %s2283_s15 = scalar_lea.vmem %s2537_s16, %s1551_s2 }
  0x63   : > { %s718_s0 = scalar_lea.vmem %s2538_s29, %s2251_s19 }
  0x64   : > { %s721_s25 = scalar_lea.vmem %s2539_s9, %s2251_s19 }
  0x65   : > { %v726_v0 = vld [vmem:[%s569_s12] sm:$0xff]  ;;  %vm727_vm0 = vcmask 261120  }
  0x66   : > { %728 = vst.msk [vmem:[#allocation2] sm:$0xff] %vm727_vm0, %v726_v0 }
  0x67 PF: > { %v733_v1 = vld [vmem:[%s691_s21 + $0x18] sm:$0xff]  ;;  %v732_v2 = vld [vmem:[%s691_s21 + $0x10] sm:$0xff]  ;;  %v731_v3 = vld [vmem:[%s691_s21 + $0x8] sm:$0xff]  ;;  %vm738_vm1 = vcmask 261120   ;;  %s2541_s8 = scalar_lea.vmem [#allocation6], %s2235_s13  ;;  %s1967_s29 = smov 104  }
  0x68   : > { %754 = vmatpush.msra.mxu0 %v733_v1  ;;  %v730_v4 = vld [vmem:[%s691_s21] sm:$0xff]  ;;  %s1968_s16 = smov 120   ;;  %s1969_s12 = smov 112   ;;  %vm771_vm2 = vcmask 64512   ;;  %vm1039_vm3 = vcmask 130048   ;;  %vm1041_vm4 = vcmask 195584  }
  0x69   : > { %v1683_v6 = vld [vmem:[%s2541_s8] ss:$0 sm:$0xff]  ;;  %s1970_s9 = smov 96   ;;  %s1971_s22 = smov 64   ;;  %vm1201_vm13 = vcmask 523264  }
  0x6a   : > { %755 = vmatpush.msra.mxu0 %v732_v2  ;;  %s1972_s3 = smov 16   ;;  %s1973_s21 = smov 8  }
  0x6b   : > { %s1974_s2 = smov 24   ;;  %s2542_s7 = scalar_lea.vmem %s2471_s4, %s2251_s19 }
  0x6c   : > { %756 = vmatpush.msra.mxu0 %v731_v3  ;;  %s2544_s10 = sld [smem:[#allocation34_spill]]  ;;  %s2546_s23 = scalar_lea.vmem [#allocation9], %s2235_s13 }
  0x6d   : > { %v2298_v5 = vld [vmem:[#allocation2] sm:$0xff]  ;;  %p1543_p9 = scmp.ne.s32.totalorder %s1949_s14, 1 }
  0x6e   : > { %757 = vmatpush.msra.mxu0 %v730_v4 }
  0x6f   : > { %1526 = vmatmul.msk.f32.vlgmr.msra.gmra.mxu0 %vm738_vm1, %v2298_v5 }
  0x72   : > { %s2545_s28 = scalar_lea.vmem %s2544_s10, %s2251_s19 }
  0xec   : > { %v759_v7 = vpop.f32.mrf.mxu0 }
  0xed   : > { %v2304_v8 = vadd.f32 %v1683_v6, %v759_v7  ;;  %v1046_v6 = vld [vmem:[%s2264_s17 + $0x18] sm:$0xff]  ;;  %v1045_v7 = vld [vmem:[%s2264_s17 + $0x10] sm:$0xff] }
  0xef   : > { %767 = vrot.lane.b32.xlu1 %v2304_v8, %s1967_s29  ;;  %763 = vrot.lane.b32.xlu0 %v2304_v8, %s1968_s16 }
  0xf7   : > { %765 = vrot.lane.b32.xlu0 %v2304_v8, %s1969_s12 }
 0x161   : > { %v2309_v9 = vpop.permute.xlu1 %767  ;;  %v2311_v10 = vpop.permute.xlu0 %763 }
 0x162   : > { %848 = vrot.lane.b32.xlu0 %v2309_v9, %s1970_s9  ;;  %796 = vrot.lane.b32.xlu1 %v2311_v10, %s1970_s9 }
 0x169   : > { %v2315_v11 = vpop.permute.xlu0 %765 }
 0x16a   : > { %822 = vrot.lane.b32.xlu2 %v2315_v11, %s1970_s9  ;;  %v1678_v48 = vpack.i.bf16 %v2315_v11, %v2311_v10 }
 0x172   : > { %769 = vrot.lane.b32.xlu2 %v2304_v8, %s1970_s9 }
 0x1c4   : > { %v823_v12 = vpop.permute.xlu2 %822 }
 0x1c5   : > { %1531 = vmatpush.xpose.msk.msra.mxu3 %vm771_vm2, %v823_v12 }
 0x1c8   : > { %1532 = vmatmul.msk.f32.vlgmr.msra.gmra.mxu3 %vm771_vm2, %v2315_v11 }
 0x1cc   : > { %v770_v13 = vpop.permute.xlu2 %769 }
 0x1cd   : > { %1527 = vmatpush.xpose.msk.msra.mxu1 %vm771_vm2, %v770_v13 }
 0x1d0   : > { %1528 = vmatmul.msk.f32.vlgmr.msra.gmra.mxu1 %vm771_vm2, %v2304_v8 }
 0x1d4   : > { %v797_v14 = vpop.permute.xlu1 %796  ;;  %v849_v15 = vpop.permute.xlu0 %848 }
 0x1d5   : > { %1529 = vmatpush.xpose.msk.msra.mxu2 %vm771_vm2, %v797_v14  ;;  %1533 = vmatpush.xpose.msk.msrb.mxu1 %vm771_vm2, %v849_v15 }
 0x1d8   : > { %1530 = vmatmul.msk.f32.vlgmr.msra.gmra.mxu2 %vm771_vm2, %v2311_v10  ;;  %1534 = vmatmul.msk.f32.vlgmr.msrb.gmra.mxu1 %vm771_vm2, %v2309_v9 }
 0x24b   : > { %v845_v16 = vpop.f32.mrf.mxu3 }
 0x24c   : > { %v876_v17 = vmul.f32 0.35355338, %v845_v16 }
 0x24d   : > { %v793_v18 = vpop.f32.mrf.mxu1 }
 0x24e   : > { %v884_v19 = vsel %vm771_vm2, %v876_v17, -inf  ;;  %v874_v20 = vmul.f32 0.35355338, %v793_v18 }
 0x24f   : > { %885 = vmax.xlane.f32.xlu2 %v884_v19 }
 0x250   : > { %v878_v23 = vsel %vm771_vm2, %v874_v20, -inf }
 0x255   : > { %v871_v21 = vpop.f32.mrf.mxu1 }
 0x256   : > { %v877_v22 = vmul.f32 0.35355338, %v871_v21 }
 0x257   : > { %879 = vmax.xlane.f32.xlu2 %v878_v23 }
 0x258   : > { %v887_v24 = vsel %vm771_vm2, %v877_v22, -inf }
 0x259   : > { %888 = vmax.xlane.f32.xlu0 %v887_v24 }
 0x25b   : > { %v819_v25 = vpop.f32.mrf.mxu2 }
 0x25c   : > { %v875_v26 = vmul.f32 0.35355338, %v819_v25 }
 0x25e   : > { %v881_v27 = vsel %vm771_vm2, %v875_v26, -inf }
 0x25f   : > { %882 = vmax.xlane.f32.xlu1 %v881_v27 }
 0x2c2   : > { %v886_v28 = vpop.xlane.xlu2 %885 }
 0x2c3   : > { %v892_v29 = vsub.f32 %v876_v17, %v886_v28  ;;  %v1684_v17 = vld [vmem:[%s2542_s7] ss:$0 sm:$0xff] }
 0x2c5   : > { %v898_v30 = vmul.f32 1.442695, %v892_v29 }
 0x2c7   : > { %1691 = vpow2.f32 %v898_v30 }
 0x2ca   : > { %v880_v31 = vpop.xlane.xlu2 %879 }
 0x2cb   : > { %v890_v35 = vsub.f32 %v874_v20, %v880_v31 }
 0x2cc   : > { %v889_v32 = vpop.xlane.xlu0 %888 }
 0x2cd   : > { %v1692_v33 = vpop.eup %1691  ;;  %v893_v34 = vsub.f32 %v877_v22, %v889_v32  ;;  %v894_v38 = vmul.f32 1.442695, %v890_v35  ;;  %v1975_v22 = vmov 32.0   ;;  %v1115_v35 = vld [vmem:[%s2273_s5 + $0x8] sm:$0xff] }
 0x2ce   : > { %v908_v36 = vsel %vm771_vm2, %v1692_v33, 0.0 }
 0x2cf   : > { %v900_v37 = vmul.f32 1.442695, %v893_v34  ;;  %909 = vadd.xlane.f32.xlu2 %v908_v36  ;;  %v1116_v34 = vld [vmem:[%s2273_s5 + $0x10] sm:$0xff]  ;;  %v1114_v36 = vld [vmem:[%s2273_s5] sm:$0xff] }
 0x2d1   : > { %1693 = vpow2.f32 %v900_v37 }
 0x2d2   : > { %v883_v39 = vpop.xlane.xlu1 %882  ;;  %1695 = vpow2.f32 %v894_v38 }
 0x2d3   : > { %v891_v40 = vsub.f32 %v875_v26, %v883_v39 }
 0x2d5   : > { %v896_v41 = vmul.f32 1.442695, %v891_v40 }
 0x2d7   : > { %v1694_v42 = vpop.eup %1693  ;;  %1697 = vpow2.f32 %v896_v41 }
 0x2d8   : > { %v911_v43 = vsel %vm771_vm2, %v1694_v42, 0.0  ;;  %v1696_v44 = vpop.eup %1695 }
 0x2d9   : > { %912 = vadd.xlane.f32.xlu0 %v911_v43  ;;  %v902_v47 = vsel %vm771_vm2, %v1696_v44, 0.0 }
 0x2dd   : > { %v1698_v45 = vpop.eup %1697 }
 0x2de   : > { %v905_v46 = vsel %vm771_vm2, %v1698_v45, 0.0 }
 0x2df   : > { %906 = vadd.xlane.f32.xlu1 %v905_v46 }
 0x2e1   : > { %903 = vadd.xlane.f32.xlu0 %v902_v47 }
 0x2e7   : > { %1000 = vrot.lane.b32.xlu2 %v2309_v9, %s1971_s22  ;;  %v1043_v9 = vld [vmem:[%s2264_s17] sm:$0xff] }
 0x2f5   : > { %922 = vrot.lane.b32.xlu0 %v2304_v8, %s1971_s22  ;;  %v1044_v8 = vld [vmem:[%s2264_s17 + $0x8] sm:$0xff]  ;;  %s2543_s17 = scalar_lea.vmem [#allocation8], %s2235_s13 }
 0x2f6   : > { %v1685_v46 = vld [vmem:[%s2543_s17] ss:$0 sm:$0xff] }
 0x2f8   : > { %1679 = vrot.lane.b32.xlu1 %v1678_v48, %s1971_s22 }
 0x342   : > { %v910_v51 = vpop.xlane.xlu2 %909 }
 0x34a   : > { %v1001_v63 = vpop.permute.xlu2 %1000 }
 0x34c   : > { %v913_v49 = vpop.xlane.xlu0 %912 }
 0x352   : > { %v907_v52 = vpop.xlane.xlu1 %906 }
 0x354   : > { %v904_v50 = vpop.xlane.xlu0 %903 }
 0x355   : > { %1699 = vrcp.f32 %v904_v50 }
 0x356   : > { %1701 = vrcp.f32 %v910_v51 }
 0x357   : > { %1703 = vrcp.f32 %v907_v52  ;;  %v1687_v52 = vld [vmem:[%s2546_s23] ss:$0 sm:$0xff] }
 0x358   : > { %1705 = vrcp.f32 %v913_v49  ;;  %v1686_v49 = vld [vmem:[%s2545_s28] ss:$0 sm:$0xff] }
 0x359   : > { %1707 = vrcp.f32 %v1975_v22 }
 0x35b   : > { %v1700_v53 = vpop.eup %1699 }
 0x35c   : > { %v918_v55 = vmul.f32 %v1700_v53, %v1696_v44  ;;  %v1702_v56 = vpop.eup %1701 }
 0x35d   : > { %v1704_v57 = vpop.eup %1703  ;;  %v920_v61 = vmul.f32 %v1702_v56, %v1692_v33  ;;  %v1117_v33 = vld [vmem:[%s2273_s5 + $0x18] sm:$0xff] }
 0x35e   : > { %v919_v62 = vmul.f32 %v1704_v57, %v1698_v45  ;;  %v1706_v0 = vpop.eup %1705 }
 0x35f   : > { %v921_v1 = vmul.f32 %v1706_v0, %v1694_v42  ;;  %v1708_v23 = vpop.eup %1707  ;;  %v1194_v0 = vld [vmem:[%s2283_s15 + $0x28] sm:$0xff] }
 0x360   : > { %v1081_v24 = vmul.f32 32.0, %v1708_v23  ;;  %vm1085_vm5 = vweird.f32 %v1708_v23 }
 0x362   : > { %v1082_v25 = vsub.f32 1.0, %v1081_v24 }
 0x364   : > { %v1083_v26 = vmul.f32 %v1708_v23, %v1082_v25 }
 0x366   : > { %v1084_v27 = vadd.f32 %v1708_v23, %v1083_v26 }
 0x367   : > { %v923_v54 = vpop.permute.xlu0 %922 }
 0x368   : > { %943 = vmatpush.msrb.mxu2 %v923_v54  ;;  %v2360_v28 = vsel %vm1085_vm5, %v1708_v23, %v1084_v27 }
 0x369   : > { %1535 = vmatmul.msk.f32.vlgmr.msrb.gmra.mxu2 %vm771_vm2, %v918_v55 }
 0x36a   : > { %v1680_v58 = vpop.permute.xlu1 %1679  ;;  %1066 = vmatpush.msra.mxu2 %v1046_v6  ;;  %v1192_v6 = vld [vmem:[%s2283_s15 + $0x18] sm:$0xff] }
 0x36b   : > { %v1682_v59 = vunpack.i.h.bf16 %v1680_v58  ;;  %v1681_v60 = vunpack.i.l.bf16 %v1680_v58  ;;  %v1196_v58 = vld [vmem:[%s2283_s15 + $0x38] sm:$0xff] }
 0x36c   : > { %1067 = vmatpush.msra.mxu2 %v1045_v7  ;;  %1213 = vmatpush.msrb.mxu0 %v1196_v58  ;;  %v1689_v58 = vld [vmem:[%s718_s0] ss:$0 sm:$0xff] }
 0x36d   : > { %969 = vmatpush.msrb.mxu3 %v1681_v60  ;;  %995 = vmatpush.msra.mxu1 %v1682_v59 }
 0x36e   : > { %1536 = vmatmul.msk.f32.vlgmr.msrb.gmra.mxu3 %vm771_vm2, %v919_v62  ;;  %1537 = vmatmul.msk.f32.vlgmr.msra.gmra.mxu1 %vm771_vm2, %v920_v61  ;;  %v1195_v61 = vld [vmem:[%s2283_s15 + $0x30] sm:$0xff] }
 0x36f   : > { %1021 = vmatpush.msrb.mxu1 %v1001_v63  ;;  %1068 = vmatpush.msra.mxu2 %v1044_v8 }
 0x370   : > { %1137 = vmatpush.msra.mxu3 %v1117_v33  ;;  %1214 = vmatpush.msrb.mxu0 %v1195_v61 }
 0x371   : > { %1069 = vmatpush.msra.mxu2 %v1043_v9  ;;  %v1191_v9 = vld [vmem:[%s2283_s15 + $0x10] sm:$0xff] }
 0x372   : > { %1138 = vmatpush.msra.mxu3 %v1116_v34  ;;  %1215 = vmatpush.msrb.mxu0 %v1194_v0 }
 0x374   : > { %1139 = vmatpush.msra.mxu3 %v1115_v35 }
 0x376   : > { %1538 = vmatmul.msk.f32.vlgmr.msrb.gmra.mxu1 %vm771_vm2, %v921_v1  ;;  %1140 = vmatpush.msra.mxu3 %v1114_v36 }
 0x3eb   : > { %v997_v2 = vpop.f32.mrf.mxu1 }
 0x3ec   : > { %1031 = vrot.lane.b32.xlu2 %v997_v2, %s1972_s3  ;;  %v945_v11 = vpop.f32.mrf.mxu2 }
 0x3f1   : > { %v971_v3 = vpop.f32.mrf.mxu3 }
 0x3f2   : > { %1027 = vrot.lane.b32.xlu1 %v971_v3, %s1973_s21  ;;  %v1193_v3 = vld [vmem:[%s2283_s15 + $0x20] sm:$0xff] }
 0x3f3   : > { %v1023_v4 = vpop.f32.mrf.mxu1  ;;  %1216 = vmatpush.msrb.mxu0 %v1193_v3 }
 0x3f5   : > { %1217 = vmatpush.msrb.mxu0 %v1192_v6 }
 0x3f7   : > { %1218 = vmatpush.msrb.mxu0 %v1191_v9 }
 0x3fa   : > { %1035 = vrot.lane.b32.xlu1 %v1023_v4, %s1974_s2 }
 0x446   : > { %v1032_v13 = vpop.permute.xlu2 %1031 }
 0x464   : > { %v1028_v10 = vpop.permute.xlu1 %1027 }
 0x465   : > { %v1038_v12 = vsel %vm771_vm2, %v945_v11, %v1028_v10  ;;  %v1190_v11 = vld [vmem:[%s2283_s15 + $0x8] sm:$0xff] }
 0x466   : > { %v1040_v15 = vsel %vm1039_vm3, %v1038_v12, %v1032_v13  ;;  %1219 = vmatpush.msrb.mxu0 %v1190_v11  ;;  %v1189_v13 = vld [vmem:[%s2283_s15] sm:$0xff] }
 0x468   : > { %1220 = vmatpush.msrb.mxu0 %v1189_v13 }
 0x46c   : > { %v1036_v14 = vpop.permute.xlu1 %1035 }
 0x46d   : > { %v1042_v16 = vsel %vm1041_vm4, %v1040_v15, %v1036_v14 }
 0x46e   : > { %1539 = vmatmul.msk.f32.vlgmr.msra.gmra.mxu2 %vm738_vm1, %v1042_v16 }
 0x4f1   : > { %v1071_v18 = vpop.f32.mrf.mxu2 }
 0x4f2   : > { %v1072_v19 = vadd.f32 %v1684_v17, %v1071_v18 }
 0x4f4   : > { %v1074_v20 = vadd.f32 %v1072_v19, %v2298_v5 }
 0x4f6   : > { %v1077_v21 = vsel %vm738_vm1, %v1074_v20, 0.0 }
 0x4f7   : > { %1078 = vadd.xlane.f32.xlu0 %v1077_v21 }
 0x56a   : > { %v1079_v29 = vpop.xlane.xlu0 %1078 }
 0x56b   : > { %v1087_v5 = vmul.f32 %v2360_v28, %v1079_v29 }
 0x56d   : > { %v1088_v30 = vsub.f32 %v1074_v20, %v1087_v5 }
 0x56f   : > { %v1089_v31 = vmul.f32 %v1088_v30, %v1088_v30 }
 0x571   : > { %v1090_v32 = vsel %vm738_vm1, %v1089_v31, 0.0 }
 0x572   : > { %1091 = vadd.xlane.f32.xlu2 %v1090_v32 }
 0x5e5   : > { %v1092_v37 = vpop.xlane.xlu2 %1091 }
 0x5e6   : > { %v1093_v38 = vmul.f32 %v1092_v37, %v2360_v28 }
 0x5e8   : > { %v1094_v39 = vadd.f32 1e-12, %v1093_v38 }
 0x5ea   : > { %1709 = vrsqrt.f32 %v1094_v39  ;;  %vm1101_vm7 = vweird.f32 %v1094_v39 }
 0x5f0   : > { %v1710_v40 = vpop.eup %1709 }
 0x5f1   : > { %v1096_v41 = vmul.f32 %v1710_v40, %v1094_v39  ;;  %vm1102_vm6 = vweird.f32 %v1710_v40  ;;  %v1688_v39 = vld [vmem:[%s715_s24] ss:$0 sm:$0xff] }
 0x5f2   : > { %vm1103_vm8 = vmor %vm1101_vm7, %vm1102_vm6 }
 0x5f3   : > { %v1097_v42 = vmul.f32 %v1710_v40, %v1096_v41 }
 0x5f5   : > { %v1098_v43 = vmul.f32 0.5, %v1097_v42 }
 0x5f7   : > { %v1099_v44 = vsub.f32 1.5, %v1098_v43 }
 0x5f9   : > { %v1100_v45 = vmul.f32 %v1710_v40, %v1099_v44 }
 0x5fb   : > { %v1104_v47 = vsel %vm1103_vm8, %v1710_v40, %v1100_v45 }
 0x5fc   : > { %v1105_v48 = vmul.f32 %v1104_v47, %v1088_v30 }
 0x5fe   : > { %v1109_v50 = vmul.f32 %v1685_v46, %v1105_v48 }
 0x600   : > { %v2376_v51 = vadd.f32 %v1686_v49, %v1109_v50 }
 0x602   : > { %1540 = vmatmul.msk.f32.vlgmr.msra.gmra.mxu3 %vm738_vm1, %v2376_v51 }
 0x685   : > { %v1142_v53 = vpop.f32.mrf.mxu3 }
 0x686   : > { %v1143_v54 = vadd.f32 %v1687_v52, %v1142_v53 }
 0x688   : > { %v1146_v55 = vmul.f32 0.70710677, %v1143_v54  ;;  %v1145_v36 = vmul.f32 0.5, %v1143_v54 }
 0x68a   : > { %v1147_v56 = vmul.f32 %v1146_v55, %v1146_v55 }
 0x68c   : > { %v1148_v57 = vmin.f32 %v1147_v56, 16.0 }
 0x68e   : > { %v1149_v59 = vmul.f32 2.1237322e-06, %v1148_v57  ;;  %v1160_v60 = vmul.f32 3.8918573e-05, %v1148_v57 }
 0x690   : > { %v1150_v62 = vadd.f32 0.00028619796, %v1149_v59  ;;  %v1161_v63 = vadd.f32 0.001143296, %v1160_v60 }
 0x692   : > { %v1151_v1 = vmul.f32 %v1150_v62, %v1148_v57  ;;  %v1162_v2 = vmul.f32 %v1161_v63, %v1148_v57 }
 0x694   : > { %v1163_v4 = vadd.f32 0.014752088, %v1162_v2  ;;  %v1152_v7 = vadd.f32 0.0036580483, %v1151_v1 }
 0x696   : > { %v1164_v8 = vmul.f32 %v1163_v4, %v1148_v57  ;;  %v1153_v12 = vmul.f32 %v1152_v7, %v1148_v57 }
 0x698   : > { %v1165_v10 = vadd.f32 0.112945676, %v1164_v8  ;;  %v1154_v16 = vadd.f32 0.05243302, %v1153_v12 }
 0x69a   : > { %v1166_v14 = vmul.f32 %v1165_v10, %v1148_v57  ;;  %v1155_v19 = vmul.f32 %v1154_v16, %v1148_v57 }
 0x69c   : > { %v1167_v15 = vadd.f32 0.4994258, %v1166_v14  ;;  %v1156_v20 = vadd.f32 0.18741608, %v1155_v19 }
 0x69e   : > { %v1168_v17 = vmul.f32 %v1167_v15, %v1148_v57  ;;  %v1157_v22 = vmul.f32 %v1156_v20, %v1148_v57 }
 0x6a0   : > { %v1169_v18 = vadd.f32 1.0, %v1168_v17  ;;  %v1158_v26 = vadd.f32 1.1283791, %v1157_v22 }
 0x6a2   : > { %1711 = vrcp.f32 %v1169_v18  ;;  %v1181_v25 = vand.u32 2147483648, %v1169_v18  ;;  %v1179_v29 = vand.u32 2147483647, %v1169_v18  ;;  %vm1175_vm10 = vweird.f32 %v1169_v18 }
 0x6a3   : > { %v1159_v31 = vmul.f32 %v1158_v26, %v1146_v55 }
 0x6a4   : > { %v1182_v30 = vor.u32 1.1754944e-38, %v1181_v25  ;;  %vm1180_vm12 = vcmp.eq.f32.partialorder %v1179_v29, 8.507059e+37 }
 0x6a8   : > { %v1712_v21 = vpop.eup %1711 }
 0x6a9   : > { %v1171_v23 = vmul.f32 %v1712_v21, %v1169_v18  ;;  %vm1176_vm9 = vweird.f32 %v1712_v21 }
 0x6aa   : > { %vm1177_vm11 = vmor %vm1175_vm10, %vm1176_vm9 }
 0x6ab   : > { %v1172_v24 = vsub.f32 1.0, %v1171_v23 }
 0x6ad   : > { %v1173_v27 = vmul.f32 %v1712_v21, %v1172_v24 }
 0x6af   : > { %v1174_v5 = vadd.f32 %v1712_v21, %v1173_v27 }
 0x6b1   : > { %v1178_v32 = vsel %vm1177_vm11, %v1712_v21, %v1174_v5 }
 0x6b2   : > { %v1183_v33 = vsel %vm1180_vm12, %v1182_v30, %v1178_v32 }
 0x6b3   : > { %v1184_v34 = vmul.f32 %v1183_v33, %v1159_v31 }
 0x6b5   : > { %v1541_v35 = vclamps-f32 %v1184_v34, 1.0 }
 0x6b7   : > { %v1187_v37 = vadd.f32 1.0, %v1541_v35 }
 0x6b9   : > { %v1188_v38 = vmul.f32 %v1187_v37, %v1145_v36 }
 0x6bb   : > { %1542 = vmatmul.msk.f32.vlgmr.msrb.gmra.mxu0 %vm1201_vm13, %v1188_v38 }
 0x738   : > { %v1222_v40 = vpop.f32.mrf.mxu0 }
 0x739   : > { %v1223_v41 = vadd.f32 %v1688_v39, %v1222_v40 }
 0x73b   : > { %v1225_v42 = vadd.f32 %v1223_v41, %v2376_v51 }
 0x73d   : > { %v1228_v43 = vsel %vm738_vm1, %v1225_v42, 0.0 }
 0x73e   : > { %1229 = vadd.xlane.f32.xlu1 %v1228_v43 }
 0x7b1   : > { %v1230_v44 = vpop.xlane.xlu1 %1229 }
 0x7b2   : > { %v1231_v45 = vmul.f32 %v1230_v44, %v2360_v28 }
 0x7b4   : > { %v1232_v46 = vsub.f32 %v1225_v42, %v1231_v45 }
 0x7b6   : > { %v1233_v47 = vmul.f32 %v1232_v46, %v1232_v46 }
 0x7b8   : > { %v1234_v48 = vsel %vm738_vm1, %v1233_v47, 0.0 }
 0x7b9   : > { %1235 = vadd.xlane.f32.xlu0 %v1234_v48 }
 0x82c   : > { %v1236_v49 = vpop.xlane.xlu0 %1235 }
 0x82d   : > { %v1237_v50 = vmul.f32 %v1236_v49, %v2360_v28  ;;  %v1690_v28 = vld [vmem:[%s721_s25] ss:$0 sm:$0xff] }
 0x82f   : > { %v1238_v52 = vadd.f32 1e-12, %v1237_v50 }
 0x831   : > { %1713 = vrsqrt.f32 %v1238_v52  ;;  %vm1245_vm15 = vweird.f32 %v1238_v52 }
 0x837   : > { %v1714_v53 = vpop.eup %1713 }
 0x838   : > { %v1240_v51 = vmul.f32 %v1714_v53, %v1238_v52  ;;  %vm1246_vm14 = vweird.f32 %v1714_v53 }
 0x839   : > { %vm1247_vm0 = vmor %vm1245_vm15, %vm1246_vm14 }
 0x83a   : > { %v1241_v54 = vmul.f32 %v1714_v53, %v1240_v51 }
 0x83c   : > { %v1242_v55 = vmul.f32 0.5, %v1241_v54 }
 0x83e   : > { %v1243_v56 = vsub.f32 1.5, %v1242_v55 }
 0x840   : > { %v1244_v57 = vmul.f32 %v1714_v53, %v1243_v56 }
 0x842   : > { %v1248_v59 = vsel %vm1247_vm0, %v1714_v53, %v1244_v57 }
 0x843   : > { %v1249_v60 = vmul.f32 %v1248_v59, %v1232_v46 }
 0x845   : > { %v1253_v61 = vmul.f32 %v1689_v58, %v1249_v60  ;;  %1262 = sbr.rel (%p1543_p9) target bundleno = 2123 (0x84b), region = 96 }
 0x847   : > { %v1257_v62 = vadd.f32 %v1690_v28, %v1253_v61 }
 0x849   : > { %1258 = vst.msk [vmem:[#allocation2] sm:$0xff] %vm738_vm1, %v1257_v62 }
 0x84a   : > { %1263 = vst.msk [vmem:[%s2295_s11] sm:$0xff] %vm738_vm1, %v1257_v62 }
 0x84b PF: > { %s2550_s0 = sld [smem:[#allocation20_spill]]  ;;  %s1277_s6 = sshll.u32 %s2295_s11, 4  ;;  %s1278_s6 = int_to_ptr.vmem [resolvable:$true] %s1277_s6 }
 0x84c   : > { %s2552_s25 = sld [smem:[#allocation41_spill]]  ;;  %s1265_s17 = scalar_lea.sflag [#allocation5], %s2223_s27 }
 0x851   : > { %s1545_s3 = sshll.u32 %s2550_s0, 3 }
 0x852   : > { %s2553_s2 = smov %s2552_s25  ;;  %s1275_s1 = scalar_lea.hbm %s2552_s25, %s1545_s3 }
 0x853   : > { %s1279_s7 = sshll.u32 %s1275_s1, 4  ;;  %s1855_s28 = scalar_lea.hbm %s2553_s2, 16  ;;  %s1280_s7 = int_to_ptr.hbm [resolvable:$true] %s1279_s7 }
 0x854   : > { %s1849_s14 = sshra.s32 %s1280_s7, 4  ;;  %s1850_s14 = int_to_ptr.hbm [resolvable:$true] %s1849_s14 }
 0x855   : > { %s1851_s5 = scalar_lea.hbm %s1850_s14, 8  ;;  %p1856_p5 = scmp.lt.s32.totalorder %s1850_s14, %s2553_s2 }
 0x856   : > { %p1852_p12 = scmp.ne.s32.totalorder %s1850_s14, %s1851_s5  ;;  %p1857_p6 = scmp.lt.s32.totalorder %s1855_s28, %s1851_s5 }
 0x858   : > { %p1853_p13 = pnand %p1852_p12, %p2182_p0  ;;  %p1858_p10 = por %p1857_p6, %p1856_p5 }
 0x85a   : > { %p1854_p4 = pneg %p1853_p13 }
 0x85c   : > { %p1859_p1 = pnand %p1858_p10, %p1854_p4 }
 0x85e   : > { %1862 = shalt.err (!%p1859_p1)
}
 0x85f   : > { %1560 = dma.vmem_to_hbm [thread:$0]  (%p2182_p0), %s1278_s6, 128, %s1280_s7, %s1265_s17  }
 0x860 PF: > { %s2554_s27 = sld [smem:[#allocation17_spill]]  ;;  %p1580_p11 = scmp.ge.s32.totalorder %s1965_s18, 2 }
 0x862   : > { %p1576_p2 = pnand %p1580_p11, %p2189_p3 }
 0x864   : > { %p1577_p8 = pneg %p1576_p2 }
 0x866   : > { %s1291_s15 = sand.u32 1, %s2554_s27  }
 0x867   : > { %s1292_s30 = scalar_lea.sflag [#allocation5], %s1291_s15 }
 0x868   : > { %1920 = dma.done.wait (%p1577_p8), %s1292_s30, 128  }
 0x869   : > { %1922 = vsyncadd (%p1577_p8), %s1292_s30, 4294967168  ;;  %s35_s18 = sadd.s32 1, %s1965_s18   ;;  %s2556_s24 = sld [smem:[#allocation16_spill]] }
 0x86a   : > { %p32_p7 = scmp.ge.s32.totalorder %s35_s18, 6   ;;  %s2557_s27 = sld [smem:[#allocation24_spill]] }
 0x86b   : > { %s2558_s28 = sld [smem:[#allocation18_spill]]  ;;  %s2565_s25 = smov %s1929_s26 }
 0x86c   : > { %s2559_s29 = sld [smem:[#allocation19_spill]] }
 0x86d   : > { %s2560_s30 = sld [smem:[#allocation28_spill]]  ;;  %34 = sbr.rel (!%p32_p7) target bundleno = 27 (0x1b), region = 189 }
 0x86e   : > { %s2561_s14 = sld [smem:[#allocation21_spill]] }
 0x86f   : > { %s2562_s15 = sld [smem:[#allocation22_spill]]  ;;  %s2566_s26 = smov %s2556_s24 }
 0x870   : > { %s2563_s16 = sld [smem:[#allocation23_spill]] }
 0x871   : > { %s2564_s17 = sld [smem:[#allocation25_spill]] }
 0x872   :  { %1298 = vsyncpa [#allocation4], 1 }
 0x873   :  { %1300 = vsyncpa [#allocation4 + $0x1], 1 }
 0x874   :  { %1301 = vsyncpa [#allocation7], 1 }
 0x875   :  { %1303 = vsyncpa [#allocation7 + $0x1], 1 }
 0x876   :  { %1304 = vsyncpa [#allocation10], 1 }
 0x877   :  { %1306 = vsyncpa [#allocation10 + $0x1], 1 }
 0x878   :  { %1307 = vsyncpa [#allocation5], 1 }
 0x879   :  { %1309 = vsyncpa [#allocation5 + $0x1], 1 }

</bundles_post_ra>
